<compile_context>
chip_gen: v7x
topology: tpu7x:2x2x1
jax: 0.10.0
libtpu: 0.0.40
codegen_flags: <defaults>
</compile_context>

<pallas_src>
import functools

import jax
import jax.numpy as jnp
from jax.experimental import pallas as pl
from jax.experimental.pallas import tpu as pltpu


def _round_up(x, m):
    return ((x + m - 1) // m) * m


def _tdnnf_kernel(x_ref, wb_ref, bb_ref, wa_ref, ba_ref, *rest,
                  bt, ctx, sub, nw, bypass_scale, use_bypass, lidx, out_pad):
    """One batch tile.

    x_ref:  (bt, T, D)          raw input frames (compute dtype)
    wb_ref: (ctx, D, bneck_p)   pre-transposed linearB weight, one (D, bneck_p) slab per
                                context offset (zero-padded along bneck)
    bb_ref: (1, bneck_p)        linearB bias, f32, zero-padded
    wa_ref: (bneck_p, out_p)    pre-transposed linearA weight, zero-padded
    ba_ref: (1, out_p)          linearA bias, f32, zero-padded
    [bypw_ref: (D, out_p)]      optional scale*I bypass matrix (only when out_dim padded)
    o_ref:  (bt, nw, out_p)     output (compute dtype), lane-dense last dim
    """
    if use_bypass and out_pad > 0:
        bypw_ref, o_ref = rest
        bypw = bypw_ref[...]
    else:
        (o_ref,) = rest
        bypw = None

    bb = bb_ref[...]                       # (1, bneck_p) f32
    ba = ba_ref[...]                       # (1, out_p)   f32
    wa = wa_ref[...]                       # (bneck_p, out_p)
    wb = [wb_ref[c] for c in range(ctx)]   # ctx x (D, bneck_p)

    for b in range(bt):                    # small static unroll over the batch tile
        if sub == 1:
            def window(c):
                return x_ref[b, pl.ds(c, nw), :]
        else:
            def window(c):
                return x_ref[b, pl.ds(c, nw, stride=sub), :]

        # ---- fused unfold: ctx partial matmuls accumulated in f32 -------------
        byp = None
        h = None
        for c in range(ctx):
            xc = window(c)                                      # (nw, D)
            if use_bypass and c == lidx:
                byp = xc                                        # reuse center window
            part = jnp.dot(xc, wb[c], preferred_element_type=jnp.float32)
            h = part if h is None else h + part
        h = h + bb                                              # (nw, bneck_p) f32

        # ---- linearA -----------------------------------------------------------
        y = jnp.dot(h.astype(wa.dtype), wa,
                    preferred_element_type=jnp.float32) + ba    # (nw, out_p) f32

        # ---- bypass ------------------------------------------------------------
        if use_bypass:
            if out_pad > 0:
                # out_dim was padded to a lane multiple: add scale*byp into the first
                # out_dim lanes via a tiny (D, out_p) scale*I matmul (keeps padding 0).
                y = y + jnp.dot(byp, bypw, preferred_element_type=jnp.float32)
            else:
                y = y + byp.astype(jnp.float32) * bypass_scale

        o_ref[b] = y.astype(o_ref.dtype)


def tdnnf_forward(inp, wb, bb, wa, ba, *, context_len, subsampling_factor,
                  bypass_scale, compute_dtype=None):
    """TDNNF forward. inp: (mb, T, D)."""
    mb, T, D = inp.shape
    out_dim, bneck = wa.shape
    ctx = int(context_len)
    sub = int(subsampling_factor)
    nw = (T - ctx) // sub + 1                     # number of unfold windows
    assert wb.shape == (bneck, ctx * D)

    if compute_dtype is None:
        compute_dtype = inp.dtype

    # --- bypass config (static python arithmetic, matches torch slicing) --------
    use_bypass = (float(bypass_scale) > 0.0) and (D == out_dim) and (ctx > 1)
    lidx = ctx // 2 if use_bypass else 0          # bypass rows == window at offset lidx

    # --- wrapper-side weight prep: transpose once, zero-pad to lane-dense x128 --
    bneck_p = _round_up(bneck, 128)
    out_p = _round_up(out_dim, 128)
    out_pad = out_p - out_dim

    wb_t = wb.T.reshape(ctx, D, bneck)                                    # (ctx, D, bneck)
    wb_t = jnp.pad(wb_t, ((0, 0), (0, 0), (0, bneck_p - bneck))).astype(compute_dtype)
    wa_t = jnp.pad(wa.T, ((0, bneck_p - bneck), (0, out_pad))).astype(compute_dtype)
    bb_p = jnp.pad(bb.reshape(1, -1).astype(jnp.float32),
                   ((0, 0), (0, bneck_p - bneck)))
    ba_p = jnp.pad(ba.reshape(1, -1).astype(jnp.float32), ((0, 0), (0, out_pad)))
    x = inp.astype(compute_dtype)

    need_byp_mat = use_bypass and out_pad > 0
    if need_byp_mat:
        byp_w = float(bypass_scale) * jnp.eye(D, dtype=jnp.float32)       # (D, D)
        byp_w = jnp.pad(byp_w, ((0, 0), (0, out_pad))).astype(compute_dtype)

    # --- batch tiling: target a few hundred output rows per grid step -----------
    bt = max(1, min(mb, 8, max(1, 512 // max(nw, 1))))
    if mb >= 2:
        bt = min(bt, -(-mb // 2))      # keep >= 2 programs so both v7x TCs get work
    num_tiles = -(-mb // bt)

    kernel = functools.partial(
        _tdnnf_kernel, bt=bt, ctx=ctx, sub=sub, nw=nw,
        bypass_scale=float(bypass_scale), use_bypass=use_bypass,
        lidx=lidx, out_pad=out_pad)

    in_specs = [
        pl.BlockSpec((bt, T, D), lambda i: (i, 0, 0)),          # raw input
        pl.BlockSpec((ctx, D, bneck_p), lambda i: (0, 0, 0)),   # Wb^T slabs (resident)
        pl.BlockSpec((1, bneck_p), lambda i: (0, 0)),           # bb
        pl.BlockSpec((bneck_p, out_p), lambda i: (0, 0)),       # Wa^T (resident)
        pl.BlockSpec((1, out_p), lambda i: (0, 0)),             # ba
    ]
    args = [x, wb_t, bb_p, wa_t, ba_p]
    if need_byp_mat:
        in_specs.append(pl.BlockSpec((D, out_p), lambda i: (0, 0)))
        args.append(byp_w)

    out_padded = pl.pallas_call(
        kernel,
        out_shape=jax.ShapeDtypeStruct((mb, nw, out_p), compute_dtype),
        grid_spec=pltpu.PrefetchScalarGridSpec(
            num_scalar_prefetch=0,
            grid=(num_tiles,),
            in_specs=in_specs,
            out_specs=pl.BlockSpec((bt, nw, out_p), lambda i: (i, 0, 0)),
        ),
        compiler_params=pltpu.CompilerParams(
            dimension_semantics=("parallel",),
            vmem_limit_bytes=32 * 1024 * 1024),
    )(*args)

    if out_pad > 0:
        return out_padded[..., :out_dim]
    return out_padded


def _reference(inp, wb, bb, wa, ba, *, context_len, subsampling_factor,
               bypass_scale):
    """Pure-JAX reference matching the PyTorch forward."""
    mb, T, D = inp.shape
    ctx, sub = context_len, subsampling_factor
    nw = (T - ctx) // sub + 1
    frame_idx = jnp.arange(nw)[:, None] * sub + jnp.arange(ctx)[None, :]
    padded = inp[:, frame_idx, :].reshape(mb, nw, ctx * D)
    x = padded @ wb.T + bb.reshape(1, 1, -1)
    x = x @ wa.T + ba.reshape(1, 1, -1)
    out_dim = wa.shape[0]
    if bypass_scale > 0.0 and D == out_dim and ctx > 1:
        lidx = ctx // 2
        ridx = -lidx if ctx % 2 == 1 else -lidx + 1
        x = x + inp[:, lidx:T + ridx:sub, :] * bypass_scale
    return x


if __name__ == "__main__":
    # Small shapes consistent with the module.
    mb, T = 2, 16
    feat_dim = 32
    output_dim = 32          # == feat_dim so the bypass path is exercised
    bottleneck_dim = 16
    context_len = 3
    subsampling_factor = 1
    bypass_scale = 0.66

    key = jax.random.PRNGKey(0)
    k_in, k_wb, k_bb, k_wa, k_ba = jax.random.split(key, 5)

    inp = jax.random.normal(k_in, (mb, T, feat_dim), dtype=jnp.float32)

    # linearB (OrthonormalLinear / NaturalAffineTransform) params:
    #   weight (bottleneck, feat_dim*ctx) ~ N(0,1)/sqrt(in*out); bias (1, bottleneck) ~ N(0,1)
    in_b = feat_dim * context_len
    wb = (jax.random.normal(k_wb, (bottleneck_dim, in_b), dtype=jnp.float32)
          / jnp.sqrt(jnp.float32(in_b * bottleneck_dim)))
    bb = jax.random.normal(k_bb, (1, bottleneck_dim), dtype=jnp.float32)

    # linearA (nn.Linear(bottleneck, output)): weight (output, bottleneck), bias (output,)
    lim = 1.0 / jnp.sqrt(jnp.float32(bottleneck_dim))
    wa = jax.random.uniform(k_wa, (output_dim, bottleneck_dim),
                            minval=-lim, maxval=lim, dtype=jnp.float32)
    ba = jax.random.uniform(k_ba, (output_dim,),
                            minval=-lim, maxval=lim, dtype=jnp.float32)

    nw = (T - context_len) // subsampling_factor + 1
    ref = _reference(inp, wb, bb, wa, ba,
                     context_len=context_len,
                     subsampling_factor=subsampling_factor,
                     bypass_scale=bypass_scale)

    # f32 operand path
    out = tdnnf_forward(inp, wb, bb, wa, ba,
                        context_len=context_len,
                        subsampling_factor=subsampling_factor,
                        bypass_scale=bypass_scale)
    out = jax.block_until_ready(out)
    assert out.shape == (mb, nw, output_dim)
    assert jnp.allclose(out, ref, atol=1e-3, rtol=1e-3)

    # bf16 operand path (f32 accumulation) for v6e/v7x MXU throughput
    out_bf16 = tdnnf_forward(inp, wb, bb, wa, ba,
                             context_len=context_len,
                             subsampling_factor=subsampling_factor,
                             bypass_scale=bypass_scale,
                             compute_dtype=jnp.bfloat16)
    out_bf16 = jax.block_until_ready(out_bf16)
    assert out_bf16.shape == (mb, nw, output_dim)
    assert jnp.allclose(out_bf16.astype(jnp.float32), ref, atol=1e-1, rtol=5e-2)

    print("KERNEL_OK")
</pallas_src>

<mosaic_0001>
module attributes {stable_mosaic.version = 11 : i64} {
  func.func @_tdnnf_kernel(%arg0: i32, %arg1: memref<1x16x32xf32, #tpu.memory_space<vmem>>, %arg2: memref<3x32x128xf32, #tpu.memory_space<vmem>>, %arg3: memref<1x128xf32, #tpu.memory_space<vmem>>, %arg4: memref<128x128xf32, #tpu.memory_space<vmem>>, %arg5: memref<1x128xf32, #tpu.memory_space<vmem>>, %arg6: memref<32x128xf32, #tpu.memory_space<vmem>>, %arg7: memref<1x14x128xf32, #tpu.memory_space<vmem>>) attributes {dimension_semantics = [#tpu.dimension_semantics<parallel>], iteration_bounds = array<i64: 2>, scalar_prefetch = 0 : i64, scratch_operands = 0 : i64, tpu.core_type = #tpu.core_type<tc>, window_params = [{transform_indices = @transform_0, window_bounds = array<i64: 1, 16, 32>}, {pipeline_mode = #tpu.pipeline_mode<synchronous>, transform_indices = @transform_1, window_bounds = array<i64: 3, 32, 128>}, {pipeline_mode = #tpu.pipeline_mode<synchronous>, transform_indices = @transform_2, window_bounds = array<i64: 1, 128>}, {pipeline_mode = #tpu.pipeline_mode<synchronous>, transform_indices = @transform_3, window_bounds = array<i64: 128, 128>}, {pipeline_mode = #tpu.pipeline_mode<synchronous>, transform_indices = @transform_4, window_bounds = array<i64: 1, 128>}, {pipeline_mode = #tpu.pipeline_mode<synchronous>, transform_indices = @transform_5, window_bounds = array<i64: 32, 128>}, {transform_indices = @transform_6, window_bounds = array<i64: 1, 14, 128>}]} {
    %c0 = arith.constant 0 : index
    %c0_0 = arith.constant 0 : index
    %0 = vector.load %arg6[%c0, %c0_0] : memref<32x128xf32, #tpu.memory_space<vmem>>, vector<32x128xf32>
    %c0_1 = arith.constant 0 : index
    %c0_2 = arith.constant 0 : index
    %1 = vector.load %arg3[%c0_1, %c0_2] : memref<1x128xf32, #tpu.memory_space<vmem>>, vector<1x128xf32>
    %c0_3 = arith.constant 0 : index
    %c0_4 = arith.constant 0 : index
    %2 = vector.load %arg5[%c0_3, %c0_4] : memref<1x128xf32, #tpu.memory_space<vmem>>, vector<1x128xf32>
    %c0_5 = arith.constant 0 : index
    %c0_6 = arith.constant 0 : index
    %3 = vector.load %arg4[%c0_5, %c0_6] : memref<128x128xf32, #tpu.memory_space<vmem>>, vector<128x128xf32>
    %c0_7 = arith.constant 0 : index
    %c0_8 = arith.constant 0 : index
    %c0_9 = arith.constant 0 : index
    %4 = vector.load %arg2[%c0_7, %c0_8, %c0_9] : memref<3x32x128xf32, #tpu.memory_space<vmem>>, vector<1x32x128xf32>
    %5 = vector.shape_cast %4 : vector<1x32x128xf32> to vector<32x128xf32>
    %c1 = arith.constant 1 : index
    %c0_10 = arith.constant 0 : index
    %c0_11 = arith.constant 0 : index
    %6 = vector.load %arg2[%c1, %c0_10, %c0_11] : memref<3x32x128xf32, #tpu.memory_space<vmem>>, vector<1x32x128xf32>
    %7 = vector.shape_cast %6 : vector<1x32x128xf32> to vector<32x128xf32>
    %c2 = arith.constant 2 : index
    %c0_12 = arith.constant 0 : index
    %c0_13 = arith.constant 0 : index
    %8 = vector.load %arg2[%c2, %c0_12, %c0_13] : memref<3x32x128xf32, #tpu.memory_space<vmem>>, vector<1x32x128xf32>
    %9 = vector.shape_cast %8 : vector<1x32x128xf32> to vector<32x128xf32>
    %c0_14 = arith.constant 0 : index
    %c0_15 = arith.constant 0 : index
    %c0_16 = arith.constant 0 : index
    %10 = vector.load %arg1[%c0_14, %c0_15, %c0_16] : memref<1x16x32xf32, #tpu.memory_space<vmem>>, vector<1x14x32xf32>
    %11 = vector.shape_cast %10 : vector<1x14x32xf32> to vector<14x32xf32>
    %cst = arith.constant dense<0.000000e+00> : vector<14x128xf32>
    %12 = tpu.matmul %11, %5, %cst {dimension_numbers = #tpu.dot_dimension_numbers<[1], [0], [0], [1], [0, 0, 1, 1], [], []>} : vector<14x32xf32>, vector<32x128xf32>, vector<14x128xf32> -> vector<14x128xf32>
    %c0_17 = arith.constant 0 : index
    %c1_18 = arith.constant 1 : index
    %c0_19 = arith.constant 0 : index
    %13 = vector.load %arg1[%c0_17, %c1_18, %c0_19] : memref<1x16x32xf32, #tpu.memory_space<vmem>>, vector<1x14x32xf32>
    %14 = vector.shape_cast %13 : vector<1x14x32xf32> to vector<14x32xf32>
    %cst_20 = arith.constant dense<0.000000e+00> : vector<14x128xf32>
    %15 = tpu.matmul %14, %7, %cst_20 {dimension_numbers = #tpu.dot_dimension_numbers<[1], [0], [0], [1], [0, 0, 1, 1], [], []>} : vector<14x32xf32>, vector<32x128xf32>, vector<14x128xf32> -> vector<14x128xf32>
    %16 = arith.addf %12, %15 : vector<14x128xf32>
    %c0_21 = arith.constant 0 : index
    %c2_22 = arith.constant 2 : index
    %c0_23 = arith.constant 0 : index
    %17 = vector.load %arg1[%c0_21, %c2_22, %c0_23] : memref<1x16x32xf32, #tpu.memory_space<vmem>>, vector<1x14x32xf32>
    %18 = vector.shape_cast %17 : vector<1x14x32xf32> to vector<14x32xf32>
    %cst_24 = arith.constant dense<0.000000e+00> : vector<14x128xf32>
    %19 = tpu.matmul %18, %9, %cst_24 {dimension_numbers = #tpu.dot_dimension_numbers<[1], [0], [0], [1], [0, 0, 1, 1], [], []>} : vector<14x32xf32>, vector<32x128xf32>, vector<14x128xf32> -> vector<14x128xf32>
    %20 = arith.addf %16, %19 : vector<14x128xf32>
    %21 = vector.broadcast %1 : vector<1x128xf32> to vector<14x128xf32>
    %22 = arith.addf %20, %21 : vector<14x128xf32>
    %cst_25 = arith.constant dense<0.000000e+00> : vector<14x128xf32>
    %23 = tpu.matmul %22, %3, %cst_25 {dimension_numbers = #tpu.dot_dimension_numbers<[1], [0], [0], [1], [0, 0, 1, 1], [], []>} : vector<14x128xf32>, vector<128x128xf32>, vector<14x128xf32> -> vector<14x128xf32>
    %24 = vector.broadcast %2 : vector<1x128xf32> to vector<14x128xf32>
    %25 = arith.addf %23, %24 : vector<14x128xf32>
    %cst_26 = arith.constant dense<0.000000e+00> : vector<14x128xf32>
    %26 = tpu.matmul %14, %0, %cst_26 {dimension_numbers = #tpu.dot_dimension_numbers<[1], [0], [0], [1], [0, 0, 1, 1], [], []>} : vector<14x32xf32>, vector<32x128xf32>, vector<14x128xf32> -> vector<14x128xf32>
    %27 = arith.addf %25, %26 : vector<14x128xf32>
    %c0_27 = arith.constant 0 : index
    %c0_28 = arith.constant 0 : index
    %c0_29 = arith.constant 0 : index
    %28 = vector.load %arg7[%c0_27, %c0_28, %c0_29] : memref<1x14x128xf32, #tpu.memory_space<vmem>>, vector<1x14x128xf32>
    %29 = vector.shape_cast %28 : vector<1x14x128xf32> to vector<14x128xf32>
    %30 = vector.shape_cast %27 : vector<14x128xf32> to vector<1x14x128xf32>
    tpu.vector_store %arg7[%c0_27, %c0_28, %c0_29], %30 {strides = array<i32>} : memref<1x14x128xf32, #tpu.memory_space<vmem>>, vector<1x14x128xf32>,
    return
  }
  func.func @transform_0(%arg0: i32) -> (i32, i32, i32) {
    %c0_i32 = arith.constant 0 : i32
    %c0_i32_0 = arith.constant 0 : i32
    %c0_i32_1 = arith.constant 0 : i32
    return %arg0, %c0_i32, %c0_i32_0 : i32, i32, i32
  }
  func.func @transform_1(%arg0: i32) -> (i32, i32, i32) {
    %c0_i32 = arith.constant 0 : i32
    %c0_i32_0 = arith.constant 0 : i32
    %c0_i32_1 = arith.constant 0 : i32
    %c0_i32_2 = arith.constant 0 : i32
    return %c0_i32, %c0_i32_0, %c0_i32_1 : i32, i32, i32
  }
  func.func @transform_2(%arg0: i32) -> (i32, i32) {
    %c0_i32 = arith.constant 0 : i32
    %c0_i32_0 = arith.constant 0 : i32
    %c0_i32_1 = arith.constant 0 : i32
    return %c0_i32, %c0_i32_0 : i32, i32
  }
  func.func @transform_3(%arg0: i32) -> (i32, i32) {
    %c0_i32 = arith.constant 0 : i32
    %c0_i32_0 = arith.constant 0 : i32
    %c0_i32_1 = arith.constant 0 : i32
    return %c0_i32, %c0_i32_0 : i32, i32
  }
  func.func @transform_4(%arg0: i32) -> (i32, i32) {
    %c0_i32 = arith.constant 0 : i32
    %c0_i32_0 = arith.constant 0 : i32
    %c0_i32_1 = arith.constant 0 : i32
    return %c0_i32, %c0_i32_0 : i32, i32
  }
  func.func @transform_5(%arg0: i32) -> (i32, i32) {
    %c0_i32 = arith.constant 0 : i32
    %c0_i32_0 = arith.constant 0 : i32
    %c0_i32_1 = arith.constant 0 : i32
    return %c0_i32, %c0_i32_0 : i32, i32
  }
  func.func @transform_6(%arg0: i32) -> (i32, i32, i32) {
    %c0_i32 = arith.constant 0 : i32
    %c0_i32_0 = arith.constant 0 : i32
    %c0_i32_1 = arith.constant 0 : i32
    return %arg0, %c0_i32, %c0_i32_0 : i32, i32, i32
  }
}

</mosaic_0001>

<bundles_post_ra>
// kernel: tpu_custom_call.1
= control target key start
LH: loop header
LB: loop body
LE: loop exit
PB: predicated region body
PF: predicated region fallthrough
CT: control target
= control target key end

     0   :  { %11 = vsyncpa [#allocation3], 0  ;;  %s1611_s0 = inlined_call_operand.hbm [shape: f32[2,16,32], index: 0, kind: input, shape index: {}]   ;;  %s1612_s1 = inlined_call_operand.hbm [shape: f32[3,32,128], index: 1, kind: input, shape index: {}]   ;;  %s1613_s2 = inlined_call_operand.vmem [shape: f32[1,128], index: 2, kind: input, shape index: {}]   ;;  %s1614_s3 = inlined_call_operand.hbm [shape: f32[128,128], index: 3, kind: input, shape index: {}]   ;;  %s1615_s4 = inlined_call_operand.vmem [shape: f32[1,128], index: 4, kind: input, shape index: {}]   ;;  %s1616_s5 = inlined_call_operand.hbm [shape: f32[32,128], index: 5, kind: input, shape index: {}]   ;;  %s1617_s6 = inlined_call_operand.vmem [shape: f32[2,14,128], index: 6, kind: output, shape index: {}]  }
   0x1   :  { %13 = vsyncpa [#allocation3 + $0x1], 0 }
   0x2   :  { %14 = vsyncpa [#allocation5], 0 }
   0x3   :  { %15 = vsyncpa [#allocation8], 0  ;;  %s1362_s21 = smov 0   ;;  %s1364_s22 = smov 0  }
   0x4   :  { %s1366_s23 = smov 0   ;;  %s1368_s24 = smov 0  }
   0x5 LB: > { %s1381_s25 = sadd.s32 4294967295, %s1319_s24   ;;  %p41_p0 = scmp.ne.s32.totalorder %s1311_s22, %s1307_s21  ;;  %s1319_s24 = sphi %s1368_s24, %s1635_s24   ;;  %s1315_s23 = sphi %s1366_s23, %s1634_s23   ;;  %s1311_s22 = sphi %s1364_s22, %s1633_s22   ;;  %s1307_s21 = sphi %s1362_s21, %s1632_s21  }
   0x6   : > { %p1618_p1 = scmp.eq.s32.totalorder %s1381_s25, 0  ;;  %p869_p2 = scmp.ge.s32.totalorder %s1319_s24, 1 }
   0x7   : > { %p183_p3 = scmp.lt.s32.totalorder %s1319_s24, 3  ;;  %s1321_s28 = smov [#allocation4]  }
   0x8   : > { %p1389_p4 = por %p1618_p1, %p41_p0  ;;  %s195_s29 = sshll.u32 %s1321_s28, 4  ;;  %s1397_s29 = int_to_ptr.vmem [resolvable:$true] %s195_s29 }
   0x9   : > { %p1393_p5 = pnand %p869_p2, %p183_p3  ;;  %s1322_s7 = smov [#allocation6]  }
   0xa   : > { %s1621_s26 = scalar_select %p1389_p4, 1, 0 }
   0xb   : > { %s1622_s27 = scalar_select %p1393_p5, 1, 0 }
   0xc   : > { %p1105_p6 = pneg %p1393_p5  ;;  %s211_s8 = sshll.u32 %s1322_s7, 4  ;;  %s1407_s8 = int_to_ptr.vmem [resolvable:$true] %s211_s8 }
   0xd   : > { %s1323_s9 = smov [#allocation7]   ;;  %s1163_s13 = scalar_lea.hbm %s1612_s1, 1536 }
   0xe   : > { %p1403_p7 = pnand %p1105_p6, %p1618_p1  ;;  %s1409_s10 = sshll.u32 %s1323_s9, 4  ;;  %s228_s10 = int_to_ptr.vmem [resolvable:$true] %s1409_s10 }
   0xf   : > { %p1164_p8 = scmp.ne.s32.totalorder %s1612_s1, %s1163_s13  ;;  %p1170_p12 = scmp.lt.u32.totalorder %s1163_s13, %s1612_s1 }
  0x10   : > { %p1419_p9 = pneg %p1403_p7 }
  0x12   : > { %p1166_p10 = pnand %p1419_p9, %p1164_p8 }
  0x14   : > { %p1167_p11 = pneg %p1166_p10 }
  0x16   : > { %p1172_p13 = pnand %p1170_p12, %p1167_p11 }
  0x18   : > { %1175 = shalt.err (!%p1172_p13)
}
  0x19   : > { %s1176_s19 = scalar_lea.vmem %s1397_s29, 1536  ;;  %p1184_p6 = scmp.lt.s32.totalorder %s1397_s29, %s1397_s29 }
  0x1a   : > { %p1177_p0 = scmp.ne.s32.totalorder %s1397_s29, %s1176_s19  ;;  %p1185_p1 = scmp.lt.s32.totalorder %s1176_s19, %s1176_s19 }
  0x1c   : > { %p1179_p2 = pnand %p1177_p0, %p1419_p9  ;;  %p1186_p8 = por %p1185_p1, %p1184_p6 }
  0x1e   : > { %p1180_p3 = pneg %p1179_p2 }
  0x20   : > { %p1187_p10 = pnand %p1186_p8, %p1180_p3 }
  0x22   : > { %1190 = shalt.err (!%p1187_p10)
}
  0x23   : > { %s1324_s20 = smov 128   ;;  %s1325_s21 = smov 8  }
  0x24   : > { %1108 = dma.hbm_to_vmem [thread:$0]  (!%p1403_p7), %s1612_s1, 1536, %s1397_s29, [#allocation5], %s1324_s20, %s1324_s20, %s1325_s21  }
  0x25   : > { %s1191_s12 = scalar_lea.hbm %s1614_s3, 2048 }
  0x26   : > { %p1192_p1 = scmp.ne.s32.totalorder %s1614_s3, %s1191_s12  ;;  %p1198_p13 = scmp.lt.u32.totalorder %s1191_s12, %s1614_s3 }
  0x28   : > { %p1194_p11 = pnand %p1192_p1, %p1419_p9 }
  0x2a   : > { %p1195_p12 = pneg %p1194_p11 }
  0x2c   : > { %p1200_p0 = pnand %p1198_p13, %p1195_p12 }
  0x2e   : > { %1203 = shalt.err (!%p1200_p0)
}
  0x2f   : > { %s1204_s29 = scalar_lea.vmem %s1407_s8, 2048  ;;  %p1212_p8 = scmp.lt.s32.totalorder %s1407_s8, %s1407_s8 }
  0x30   : > { %p1205_p2 = scmp.ne.s32.totalorder %s1407_s8, %s1204_s29  ;;  %p1213_p10 = scmp.lt.s32.totalorder %s1204_s29, %s1204_s29 }
  0x32   : > { %p1207_p3 = pnand %p1205_p2, %p1419_p9  ;;  %p1214_p1 = por %p1213_p10, %p1212_p8 }
  0x34   : > { %p1208_p6 = pneg %p1207_p3 }
  0x36   : > { %p1215_p11 = pnand %p1214_p1, %p1208_p6 }
  0x38   : > { %1218 = shalt.err (!%p1215_p11)
}
  0x39   : > { %1111 = dma.hbm_to_vmem [thread:$0]  (!%p1403_p7), %s1614_s3, 2048, %s1407_s8, [#allocation5], %s1324_s20, %s1324_s20, %s1325_s21  }
  0x3a   : > { %s1219_s9 = scalar_lea.hbm %s1616_s5, 512 }
  0x3b   : > { %p1220_p12 = scmp.ne.s32.totalorder %s1616_s5, %s1219_s9  ;;  %p1226_p2 = scmp.lt.u32.totalorder %s1219_s9, %s1616_s5 }
  0x3d   : > { %p1222_p13 = pnand %p1220_p12, %p1419_p9 }
  0x3f   : > { %p1223_p0 = pneg %p1222_p13 }
  0x41   : > { %p1228_p3 = pnand %p1226_p2, %p1223_p0 }
  0x43   : > { %1231 = shalt.err (!%p1228_p3)
}
  0x44   : > { %s1232_s15 = scalar_lea.vmem %s228_s10, 512  ;;  %p1240_p1 = scmp.lt.s32.totalorder %s228_s10, %s228_s10 }
  0x45   : > { %p1233_p6 = scmp.ne.s32.totalorder %s228_s10, %s1232_s15  ;;  %p1241_p11 = scmp.lt.s32.totalorder %s1232_s15, %s1232_s15 }
  0x47   : > { %p1235_p8 = pnand %p1233_p6, %p1419_p9  ;;  %p1242_p4 = por %p1241_p11, %p1240_p1 }
  0x49   : > { %p1236_p10 = pneg %p1235_p8 }
  0x4b   : > { %p1243_p5 = pnand %p1242_p4, %p1236_p10 }
  0x4d   : > { %1246 = shalt.err (!%p1243_p5)
}
  0x4e   : > { %1114 = dma.hbm_to_vmem [thread:$0]  (!%p1403_p7), %s1616_s5, 512, %s228_s10, [#allocation8], %s1324_s20, %s1324_s20, %s1325_s21  }
  0x4f   : > { %s1492_s16 = sadd.s32 1, %s1319_s24   ;;  %s28_s29 = sadd.s32 1, %s1315_s23 }
  0x50   : > { %s25_s30 = ssub.s32 %s1319_s24, %s1492_s16  ;;  %p35_p5 = scmp.ne.s32.totalorder %s1315_s23, %s1311_s22 }
  0x51   : > { %p26_p4 = scmp.eq.s32.totalorder %s25_s30, 0  ;;  %p36_p9 = scmp.eq.s32.totalorder %s1319_s24, 0 }
  0x52   : > { %p1122_p12 = scmp.lt.s32.totalorder %s1319_s24, 2  ;;  %s241_s19 = sand.u32 1, %s1315_s23  }
  0x53   : > { %s1502_s18 = scalar_select %p26_p4, %s1315_s23, %s28_s29  }
  0x54   : > { %p37_p13 = por %p36_p9, %p35_p5  ;;  %s874_s28 = sshll.u32 %s241_s19, 4 }
  0x55   : > { %s896_s7 = sshll.u32 %s1319_s24, 8  ;;  %s245_s10 = scalar_lea.vmem [#allocation2], %s874_s28 }
  0x56   : > { %s1509_s12 = scalar_lea.hbm %s1611_s0, %s896_s7  ;;  %s252_s13 = sshll.u32 %s245_s10, 4  ;;  %s1511_s13 = int_to_ptr.vmem [resolvable:$true] %s252_s13 }
  0x57   : > { %p1513_p7 = pnand %p1122_p12, %p37_p13  ;;  %s1517_s24 = scalar_lea.sflag [#allocation3], %s241_s19 }
  0x58   : > { %s1247_s15 = scalar_lea.hbm %s1509_s12, 256  ;;  %s1252_s30 = scalar_lea.hbm %s1611_s0, 512 }
  0x59   : > { %p1248_p0 = scmp.ne.s32.totalorder %s1509_s12, %s1247_s15  ;;  %p1249_p2 = pneg %p1513_p7 }
  0x5a   : > { %p1253_p8 = scmp.lt.u32.totalorder %s1509_s12, %s1611_s0  ;;  %p1254_p10 = scmp.lt.u32.totalorder %s1252_s30, %s1247_s15 }
  0x5b   : > { %p1250_p3 = pnand %p1249_p2, %p1248_p0  ;;  %p1256_p11 = scmp.lt.u32.totalorder %s1247_s15, %s1509_s12 }
  0x5c   : > { %p1255_p1 = por %p1254_p10, %p1253_p8 }
  0x5d   : > { %p1251_p6 = pneg %p1250_p3 }
  0x5e   : > { %p1257_p4 = por %p1256_p11, %p1255_p1 }
  0x60   : > { %p1258_p5 = pnand %p1257_p4, %p1251_p6 }
  0x62   : > { %1261 = shalt.err (!%p1258_p5)
}
  0x63   : > { %s1262_s19 = scalar_lea.vmem %s1511_s13, 256  ;;  %s1326_s7 = smov [#allocation2]  }
  0x64   : > { %p1263_p9 = scmp.ne.s32.totalorder %s1511_s13, %s1262_s19  ;;  %s1267_s9 = sshll.u32 %s1326_s7, 4  ;;  %s1268_s9 = int_to_ptr.vmem [resolvable:$false] %s1267_s9 }
  0x65   : > { %s1269_s11 = scalar_lea.vmem %s1268_s9, 512  ;;  %p1270_p0 = scmp.lt.s32.totalorder %s1511_s13, %s1268_s9 }
  0x66   : > { %p1265_p12 = pnand %p1263_p9, %p1249_p2  ;;  %p1271_p3 = scmp.lt.s32.totalorder %s1269_s11, %s1262_s19 }
  0x68   : > { %p1266_p13 = pneg %p1265_p12  ;;  %p1272_p8 = por %p1271_p3, %p1270_p0 }
  0x6a   : > { %p1273_p10 = pnand %p1272_p8, %p1266_p13 }
  0x6c   : > { %1276 = shalt.err (!%p1273_p10)
}
  0x6d   : > { %1118 = dma.hbm_to_vmem [thread:$0]  (!%p1513_p7), %s1509_s12, 256, %s1511_s13, %s1517_s24, %s1324_s20, %s1324_s20, %s1325_s21  }
  0x6e   : > { %p1626_p2 = scmp.ne.s32.totalorder %s1622_s27, 0 }
  0x6f   : > { %s266_s10 = sand.u32 (!%p1626_p2), 1, %s1311_s22   ;;  %p1627_p6 = scmp.ne.s32.totalorder (!%p1626_p2), %s1621_s26, 0 }
  0x70   : > { %264 = sbr.rel (%p1626_p2) target bundleno = 587 (0x24b), region = 44  ;;  %s878_s15 = sshll.u32 (!%p1626_p2), %s266_s10, 4 }
  0x71   : > { %s267_s8 = scalar_lea.sflag (!%p1626_p2), [#allocation3], %s266_s10  ;;  %s1551_s17 = scalar_lea.vmem (!%p1626_p2), [#allocation2], %s878_s15 }
  0x77   : > { %1294 = dma.done.wait (%p1627_p6), %s267_s8, 256  }
  0x78   : > { %1296 = vsyncadd (%p1627_p6), %s267_s8, 4294967040  ;;  %p1628_p1 = scmp.eq.s32.totalorder %s1381_s25, 0 }
  0x7a   : > { %1298 = dma.done.wait (%p1628_p1), [#allocation5], 3584   ;;  %p1629_p7 = pmov %p1628_p1 }
  0x7b   : > { %p1630_p11 = pmov %p1628_p1 }
  0x7c   : > { %1300 = vsyncadd (%p1629_p7), [#allocation5], 4294963712 }
  0x7d   : > { %1302 = dma.done.wait (%p1630_p11), [#allocation8], 512   ;;  %p1631_p4 = pmov %p1628_p1 }
  0x7e   : > { %vm356_vm0 = vcmask 261120   ;;  %v343_v0 = vld [vmem:[#allocation4 + $0x20] sm:$0xff]  ;;  %v344_v1 = vld [vmem:[#allocation4 + $0x28] sm:$0xff]  ;;  %v345_v2 = vld [vmem:[#allocation4 + $0x30] sm:$0xff]  ;;  %p311_p5 = scmp.lt.s32.totalorder %s1381_s25, 1 }
  0x7f   : > { %1304 = vsyncadd (%p1631_p4), [#allocation8], 4294966784  ;;  %v1019_v3 = vpack.c.bf16 %v344_v1, %v343_v0  ;;  %v346_v4 = vld [vmem:[#allocation4 + $0x38] sm:$0xff]  ;;  %v338_v7 = vld [vmem:[#allocation4] sm:$0xff] }
  0x80   : > { %v1566_v5 = vld [vmem:[%s1551_s17 + $0x1] sm:$0xff]  ;;  %v1023_v6 = vpack.c.bf16 %v346_v4, %v345_v2  ;;  %v1571_v17 = vld [vmem:[%s1551_s17 + $0x9] sm:$0x3f]  ;;  %v890_v54 = vld [vmem:[%s1613_s2] ss:$0 sm:$0xff]  ;;  %s1637_s25 = smov (!%p311_p5, %s1381_s25), 1 }
  0x81   : > { %948 = vmatprep.mubr.msk.f32.mxu0 %vm356_vm0, %v1566_v5  ;;  %v339_v8 = vld [vmem:[#allocation4 + $0x8] sm:$0xff]  ;;  %1020 = vmatprep.subr.bf16.mxu0 %v1019_v3  ;;  %v340_v10 = vld [vmem:[#allocation4 + $0x10] sm:$0xff]  ;;  %v341_v11 = vld [vmem:[#allocation4 + $0x18] sm:$0xff]  ;;  %s897_s12 = sshll.u32 %s1637_s25, 4 }
  0x82   : > { %1022 = vmatpush3.bf16.msra.mxu0 %v1019_v3  ;;  %v1027_v9 = vpack.c.bf16 %v339_v8, %v338_v7  ;;  %v322_v12 = vld [vmem:[#allocation6] sm:$0xff]  ;;  %v323_v13 = vld [vmem:[#allocation6 + $0x8] sm:$0xff]  ;;  %v324_v14 = vld [vmem:[#allocation6 + $0x10] sm:$0xff]  ;;  %v1031_v21 = vpack.c.bf16 %v341_v11, %v340_v10  ;;  %s315_s24 = scalar_lea.vmem %s1617_s6, %s897_s12 }
  0x83   : > { %1024 = vmatprep.subr.bf16.mxu0 %v1023_v6  ;;  %v1043_v15 = vpack.c.bf16 %v323_v13, %v322_v12  ;;  %v325_v16 = vld [vmem:[#allocation6 + $0x18] sm:$0xff]  ;;  %v326_v19 = vld [vmem:[#allocation6 + $0x20] sm:$0xff]  ;;  %v327_v20 = vld [vmem:[#allocation6 + $0x28] sm:$0xff] }
  0x84   : > { %v1047_v18 = vpack.c.bf16 %v325_v16, %v324_v14  ;;  %v352_v22 = vld [vmem:[%s1551_s17] sm:$0xff]  ;;  %v349_v24 = vld [vmem:[#allocation4 + $0x48] sm:$0xff]  ;;  %v1051_v25 = vpack.c.bf16 %v327_v20, %v326_v19  ;;  %v329_v27 = vld [vmem:[#allocation6 + $0x38] sm:$0xff] }
  0x85   : > { %1044 = vmatprep.subr.bf16.mxu1 %v1043_v15  ;;  %v348_v23 = vld [vmem:[#allocation4 + $0x40] sm:$0xff]  ;;  %v328_v26 = vld [vmem:[#allocation6 + $0x30] sm:$0xff]  ;;  %v351_v30 = vld [vmem:[#allocation4 + $0x58] sm:$0xff] }
  0x86   : > { %1026 = vmatpush3.bf16.msra.mxu0 %v1023_v6  ;;  %1046 = vmatpush3.bf16.msra.mxu1 %v1043_v15  ;;  %v1035_v28 = vpack.c.bf16 %v349_v24, %v348_v23  ;;  %v350_v29 = vld [vmem:[#allocation4 + $0x50] sm:$0xff]  ;;  %v1055_v31 = vpack.c.bf16 %v329_v27, %v328_v26  ;;  %v353_v32 = vld [vmem:[%s1551_s17 + $0x8] sm:$0x3f]  ;;  %v330_v33 = vld [vmem:[#allocation6 + $0x40] sm:$0xff] }
  0x87   : > { %1028 = vmatprep.subr.bf16.mxu0 %v1027_v9  ;;  %1048 = vmatprep.subr.bf16.mxu1 %v1047_v18  ;;  %v331_v34 = vld [vmem:[#allocation6 + $0x48] sm:$0xff]  ;;  %v1039_v35 = vpack.c.bf16 %v351_v30, %v350_v29  ;;  %v316_v37 = vld [vmem:[#allocation7] sm:$0xff]  ;;  %v332_v40 = vld [vmem:[#allocation6 + $0x50] sm:$0xff] }
  0x88   : > { %v519_v36 = vld [vmem:[%s1551_s17 + $0x2] sm:$0xff]  ;;  %v1059_v39 = vpack.c.bf16 %v331_v34, %v330_v33  ;;  %v520_v44 = vld [vmem:[%s1551_s17 + $0xa] sm:$0x3f]  ;;  %v891_v61 = vld [vmem:[%s1615_s4] ss:$0 sm:$0xff] }
  0x89   : > { %949 = vmatmul.mubr.msk.f32.vlgmr.msra.gmra.mrb[0].mxu0 %vm356_vm0, %v1571_v17  ;;  %v317_v38 = vld [vmem:[#allocation7 + $0x8] sm:$0xff]  ;;  %v333_v41 = vld [vmem:[#allocation6 + $0x58] sm:$0xff]  ;;  %v334_v45 = vld [vmem:[#allocation6 + $0x60] sm:$0xff] }
  0x8a   : > { %1030 = vmatpush3.bf16.msra.mxu0 %v1027_v9  ;;  %959 = vmatprep.mubr.msk.f32.mxu0 %vm356_vm0, %v352_v22  ;;  %v1075_v42 = vpack.c.bf16 %v317_v38, %v316_v37  ;;  %v1063_v43 = vpack.c.bf16 %v333_v41, %v332_v40  ;;  %v335_v46 = vld [vmem:[#allocation6 + $0x68] sm:$0xff]  ;;  %v336_v48 = vld [vmem:[#allocation6 + $0x70] sm:$0xff]  ;;  %v337_v49 = vld [vmem:[#allocation6 + $0x78] sm:$0xff] }
  0x8b   : > { %1032 = vmatprep.subr.bf16.mxu0 %v1031_v21  ;;  %1050 = vmatpush3.bf16.msra.mxu1 %v1047_v18  ;;  %v1067_v47 = vpack.c.bf16 %v335_v46, %v334_v45  ;;  %v1071_v50 = vpack.c.bf16 %v337_v49, %v336_v48  ;;  %v318_v51 = vld [vmem:[#allocation7 + $0x10] sm:$0xff]  ;;  %v319_v52 = vld [vmem:[#allocation7 + $0x18] sm:$0xff] }
  0x8c   : > { %1052 = vmatprep.subr.bf16.mxu1 %v1051_v25  ;;  %v1079_v53 = vpack.c.bf16 %v319_v52, %v318_v51 }
  0x8e   : > { %1034 = vmatpush3.bf16.msra.mxu0 %v1031_v21 }
  0x8f   : > { %1036 = vmatprep.subr.bf16.mxu0 %v1035_v28  ;;  %1054 = vmatpush3.bf16.msra.mxu1 %v1051_v25 }
  0x90   : > { %1056 = vmatprep.subr.bf16.mxu1 %v1055_v31 }
  0x91   : > { %960 = vmatmul.mubr.msk.f32.vlgmr.msra.gmra.mrb[0].mxu0 %vm356_vm0, %v353_v32 }
  0x92   : > { %1038 = vmatpush3.bf16.msra.mxu0 %v1035_v28  ;;  %970 = vmatprep.mubr.msk.f32.mxu0 %vm356_vm0, %v519_v36 }
  0x93   : > { %1040 = vmatprep.subr.bf16.mxu0 %v1039_v35  ;;  %1058 = vmatpush3.bf16.msra.mxu1 %v1055_v31 }
  0x94   : > { %1060 = vmatprep.subr.bf16.mxu1 %v1059_v39 }
  0x96   : > { %1042 = vmatpush3.bf16.msra.mxu0 %v1039_v35 }
  0x97   : > { %1076 = vmatprep.subr.bf16.mxu0 %v1075_v42  ;;  %1062 = vmatpush3.bf16.msra.mxu1 %v1059_v39 }
  0x98   : > { %1064 = vmatprep.subr.bf16.mxu1 %v1063_v43 }
  0x99   : > { %971 = vmatmul.mubr.msk.f32.vlgmr.msra.gmra.mrb[0].mxu0 %vm356_vm0, %v520_v44 }
  0x9a   : > { %1078 = vmatpush3.bf16.msra.mxu0 %v1075_v42  ;;  %1016 = vmatprep.mubr.msk.f32.mxu0 %vm356_vm0, %v1566_v5 }
  0x9b   : > { %1066 = vmatpush3.bf16.msra.mxu1 %v1063_v43  ;;  %1080 = vmatprep.subr.bf16.mxu0 %v1079_v53 }
  0x9c   : > { %1068 = vmatprep.subr.bf16.mxu1 %v1067_v47 }
  0x9e   : > { %1082 = vmatpush3.bf16.msra.mxu0 %v1079_v53 }
  0x9f   : > { %1070 = vmatpush3.bf16.msra.mxu1 %v1067_v47 }
  0xa0   : > { %1072 = vmatprep.subr.bf16.mxu1 %v1071_v50 }
  0xa1   : > { %1017 = vmatmul.mubr.msk.f32.vlgmr.msra.gmra.mrb[2].mxu0 %vm356_vm0, %v1571_v17 }
  0xa3   : > { %1074 = vmatpush3.bf16.msra.mxu1 %v1071_v50 }
 0x16c   : > { %v972_v55 = vpop.f32.mrb[0].mxu0 }
 0x16d   : > { %v593_v56 = vpop.f32.mrb[1].mxu0  ;;  %v611_v58 = vadd.f32 %v972_v55, %v890_v54 }
 0x16e   : > { %v610_v57 = vadd.f32 %v890_v54, %v593_v56 }
 0x170   : > { %1005 = vmatprep.mubr.f32.mxu1 %v610_v57 }
 0x171   : > { %1006 = vmatmul.mubr.f32.vlgmr.msra.gmra.mrb[0].mxu1 %v611_v58 }
 0x174   : > { %v1018_v59 = vpop.f32.mrb[2].mxu0 }
 0x175   : > { %v759_v60 = vpop.f32.mrb[3].mxu0 }
 0x244   : > { %v1007_v62 = vpop.f32.mrb[0].mxu1 }
 0x245   : > { %v690_v63 = vadd.f32 %v1007_v62, %v891_v61  ;;  %v684_v0 = vpop.f32.mrb[1].mxu1 }
 0x246   : > { %v685_v1 = vadd.f32 %v891_v61, %v684_v0 }
 0x247   : > { %v769_v2 = vadd.f32 %v1018_v59, %v690_v63 }
 0x248   : > { %v768_v3 = vadd.f32 %v759_v60, %v685_v1 }
 0x249   : > { %771 = vst [vmem:[%s315_s24 + $0x8] sm:$0x3f] %v769_v2 }
 0x24a   : > { %770 = vst [vmem:[%s315_s24] sm:$0xff] %v768_v3 }
 0x24b PF: > { %p18_p9 = scmp.ge.s32.totalorder %s1492_s16, 4   ;;  %s1632_s21 = smov %s1311_s22 }
 0x24c   : > { %s1633_s22 = smov %s1315_s23  ;;  %s1634_s23 = smov %s1502_s18 }
 0x24d   : > { %s1635_s24 = smov %s1492_s16  ;;  %20 = sbr.rel (!%p18_p9) target bundleno = 5 (0x5), region = 98 }
 0x254   :  { %793 = vsyncpa [#allocation3], 1 }
 0x255   :  { %795 = vsyncpa [#allocation3 + $0x1], 1 }
 0x256   :  { %796 = vsyncpa [#allocation5], 1 }
 0x257   :  { %797 = vsyncpa [#allocation8], 1 }

</bundles_post_ra>
